<compile_context>
chip_gen: v7x
topology: tpu7x:2x2x1
jax: 0.10.0
libtpu: 0.0.40
codegen_flags: <defaults>
</compile_context>

<pallas_src>
import functools
import math

import jax
import jax.numpy as jnp
from jax import lax
from jax.experimental import pallas as pl
from jax.experimental.pallas import tpu as pltpu

_INV_SQRT2 = 0.7071067811865476        # 1/sqrt(2)   (no vector divide)
_SQRT_2_OVER_PI = 0.7978845608028654   # sqrt(2/pi)  (tanh-approx GELU)
_LN_EPS = 1e-12


# ---------------------------------------------------------------------------
# Helpers
# ---------------------------------------------------------------------------
def _vmem_budget_bytes():
    """(tile budget, vmem_limit_bytes) derived from this chip's physical VMEM."""
    phys = 64 << 20  # conservative fallback = v7x physical VMEM per TC
    try:
        info = pltpu.get_tpu_info()
        cap = getattr(info, "vmem_capacity_bytes", None) or getattr(
            info, "vmem_size_bytes", None)
        if cap:
            phys = int(cap)
    except Exception:
        pass
    # ~70% of physical: ~45 MiB on v7x (64 MiB), ~90 MiB on v5e/v6e (128 MiB).
    budget = min(int(phys * 0.7), 96 << 20)
    limit = max(budget, min(phys - (8 << 20), budget + (16 << 20)))
    return budget, limit


def _make_spec(shape, index_map, n_buffers=None):
    """BlockSpec, optionally single/multi-buffered; falls back if unsupported."""
    if n_buffers is not None:
        try:
            return pl.BlockSpec(shape, index_map,
                                pipeline_mode=pl.Buffered(n_buffers))
        except Exception:
            pass
    return pl.BlockSpec(shape, index_map)


def _half_keeps_lane(t):      # halving keeps last-dim %128 legality
    return t % 2 == 0 and (t // 2) % 128 == 0


def _half_keeps_sublane(t):   # halving keeps second-last-dim %8 legality
    return t % 2 == 0 and (t // 2) % 8 == 0


def _gelu_f32(y, exact):
    if exact:
        # exact erf-GELU (matches the PyTorch module): y*(0.5 + 0.5*erf(y/sqrt2))
        return y * (0.5 + 0.5 * lax.erf(y * _INV_SQRT2))
    # tanh approximation: transcendental runs on the EUP (separate VLIW slot)
    return 0.5 * y * (1.0 + jnp.tanh(_SQRT_2_OVER_PI * (y + 0.044715 * (y * y * y))))


# ---------------------------------------------------------------------------
# BertIntermediate: x @ W1 + b1 -> GELU
# ---------------------------------------------------------------------------
def _bert_intermediate_kernel(x_ref, w_ref, b_ref, o_ref, *, compute_dtype,
                              exact_gelu):
    # cast in-VMEM (no wrapper-side extra HBM pass); f32 accumulate on the MXU
    x = x_ref[...].astype(compute_dtype)
    w = w_ref[...].astype(compute_dtype)
    y = jnp.dot(x, w, preferred_element_type=jnp.float32) + b_ref[...]
    o_ref[...] = _gelu_f32(y, exact_gelu).astype(o_ref.dtype)


def _select_intermediate_tiles(M, H, I, x_b, w_b, c_b, o_b, tm, tn, budget):
    tm = min(tm, M)
    tn = min(tn, I)

    def fp(a, b):
        x_t = 2 * a * H * x_b                       # double-buffered activations
        w_t = 1 * H * b * w_b                       # single-buffered resident weight
        bia = 2 * b * 4
        out_t = 2 * a * b * o_b                     # double-buffered output
        casts = a * H * c_b + H * b * c_b           # in-kernel bf16 copies
        temps = 3 * a * b * 4                       # f32 matmul result + GELU temps
        return x_t + w_t + bia + out_t + casts + temps

    while fp(tm, tn) > budget and tn > 512 and _half_keeps_lane(tn):
        tn //= 2
    while fp(tm, tn) > budget and tm > 256 and _half_keeps_sublane(tm):
        tm //= 2
    while fp(tm, tn) > budget and tn > 128 and _half_keeps_lane(tn):
        tn //= 2
    while fp(tm, tn) > budget and tm > 8 and _half_keeps_sublane(tm):
        tm //= 2
    return tm, tn


def _bert_intermediate_impl(hidden_states, weight, bias, *, tm, tn, compute_dtype,
                            out_dtype, exact_gelu, single_buffer_resident):
    B, S, H = hidden_states.shape
    Hw, I = weight.shape
    assert Hw == H, "weight must be stored as [hidden, intermediate]"
    M = B * S

    x2d = hidden_states.reshape(M, H)                     # no dtype cast here
    b2d = bias.astype(jnp.float32).reshape(1, I)          # tiny vector, f32

    x_b = x2d.dtype.itemsize
    w_b = weight.dtype.itemsize
    c_b = jnp.dtype(compute_dtype).itemsize
    o_b = jnp.dtype(out_dtype).itemsize

    budget, vmem_limit = _vmem_budget_bytes()
    tm, tn = _select_intermediate_tiles(M, H, I, x_b, w_b, c_b, o_b, tm, tn, budget)

    n_i = pl.cdiv(M, tm)   # M tiles
    n_j = pl.cdiv(I, tn)   # intermediate-feature tiles

    # Choose the resident operand to minimize HBM traffic.
    traffic_w_res = w_b * H * I + x_b * M * H * n_j       # W read once
    traffic_x_res = x_b * M * H + w_b * H * I * n_i       # x read once
    weight_resident = traffic_w_res <= traffic_x_res

    nbuf = 1 if single_buffer_resident else None

    if weight_resident:
        grid = (n_j, n_i)                                  # outer: j, inner: i
        in_specs = [
            pl.BlockSpec((tm, H), lambda j, i: (i, 0)),                  # activations
            _make_spec((H, tn), lambda j, i: (0, j), n_buffers=nbuf),    # weight
            _make_spec((1, tn), lambda j, i: (0, j), n_buffers=nbuf),    # bias
        ]
        out_spec = pl.BlockSpec((tm, tn), lambda j, i: (i, j))
        bytes_accessed = traffic_w_res + 4 * I + o_b * M * I
    else:
        grid = (n_i, n_j)                                  # outer: i, inner: j
        in_specs = [
            _make_spec((tm, H), lambda i, j: (i, 0), n_buffers=nbuf),    # activations
            pl.BlockSpec((H, tn), lambda i, j: (0, j)),                  # weight
            pl.BlockSpec((1, tn), lambda i, j: (0, j)),                  # bias
        ]
        out_spec = pl.BlockSpec((tm, tn), lambda i, j: (i, j))
        bytes_accessed = traffic_x_res + 4 * I * n_i + o_b * M * I

    kernel = functools.partial(_bert_intermediate_kernel,
                               compute_dtype=compute_dtype, exact_gelu=exact_gelu)

    cost = pl.CostEstimate(flops=2 * M * H * I, transcendentals=M * I,
                           bytes_accessed=int(bytes_accessed))

    out2d = pl.pallas_call(
        kernel,
        out_shape=jax.ShapeDtypeStruct((M, I), out_dtype),
        grid_spec=pltpu.PrefetchScalarGridSpec(
            num_scalar_prefetch=0,
            grid=grid,
            in_specs=in_specs,
            out_specs=out_spec,
        ),
        compiler_params=pltpu.CompilerParams(
            # outer axis parallel -> megacore shards it, keeping the resident
            # operand read once per core; inner axis sequential.
            dimension_semantics=("parallel", "arbitrary"),
            vmem_limit_bytes=int(vmem_limit),
        ),
        cost_estimate=cost,
    )(x2d, weight, b2d)

    return out2d.reshape(B, S, I)


def bert_intermediate(hidden_states, weight, bias, *, tm=1024, tn=2048,
                      compute_dtype=jnp.bfloat16, out_dtype=None,
                      exact_gelu=True, single_buffer_resident=True):
    """hidden_states [B,S,H]; weight [H,I] (transpose of PyTorch); bias [I].

    compute_dtype: MXU operand dtype (default bf16; accumulation is f32).
    Pass weights pre-cast to bf16 to also halve weight HBM traffic.
    """
    out_dtype = hidden_states.dtype if out_dtype is None else out_dtype
    try:
        return _bert_intermediate_impl(
            hidden_states, weight, bias, tm=tm, tn=tn, compute_dtype=compute_dtype,
            out_dtype=out_dtype, exact_gelu=exact_gelu,
            single_buffer_resident=single_buffer_resident)
    except Exception:
        if not single_buffer_resident:
            raise
        # Fallback if this JAX build rejects pl.Buffered(1) single-buffering.
        return _bert_intermediate_impl(
            hidden_states, weight, bias, tm=tm, tn=tn, compute_dtype=compute_dtype,
            out_dtype=out_dtype, exact_gelu=exact_gelu, single_buffer_resident=False)


# ---------------------------------------------------------------------------
# Fused FFN: LayerNorm(gelu(x@W1+b1) @ W2 + b2 + x)  (BertIntermediate+BertOutput)
# ---------------------------------------------------------------------------
def _bert_ffn_kernel(x_ref, w1_ref, b1_ref, w2_ref, b2_ref, g_ref, bt_ref,
                     o_ref, acc_ref, *, compute_dtype, exact_gelu, ln_eps):
    k = pl.program_id(1)

    @pl.when(k == 0)
    def _():
        acc_ref[...] = jnp.zeros_like(acc_ref)

    x = x_ref[...].astype(compute_dtype)
    w1 = w1_ref[...].astype(compute_dtype)
    h = jnp.dot(x, w1, preferred_element_type=jnp.float32) + b1_ref[...]
    h = _gelu_f32(h, exact_gelu)
    w2 = w2_ref[...].astype(compute_dtype)
    acc_ref[...] += jnp.dot(h.astype(compute_dtype), w2,
                            preferred_element_type=jnp.float32)

    @pl.when(k == pl.num_programs(1) - 1)
    def _():
        # dropout is identity in eval mode; residual is the kernel input itself
        y = acc_ref[...] + b2_ref[...] + x_ref[...].astype(jnp.float32)
        mu = jnp.mean(y, axis=-1, keepdims=True)
        var = jnp.mean(jnp.square(y - mu), axis=-1, keepdims=True)
        y = (y - mu) * lax.rsqrt(var + ln_eps)
        o_ref[...] = (y * g_ref[...] + bt_ref[...]).astype(o_ref.dtype)


def _select_ffn_tiles(M, H, I, x_b, w_b, c_b, o_b, tm, tk, budget):
    tm = min(tm, M)
    tk = min(tk, I)

    def fp(a, c):
        x_t = 1 * a * H * x_b                       # single-buffered resident x
        w1_t = 2 * H * c * w_b                      # double-buffered W1 chunk
        w2_t = 2 * c * H * w_b                      # double-buffered W2 chunk
        vecs = 2 * (c + 3 * H) * 4
        out_t = 2 * a * H * o_b
        acc = a * H * 4                             # f32 accumulator scratch
        casts = a * H * c_b + 2 * H * c * c_b + a * c * c_b
        temps = 3 * a * c * 4 + 2 * a * H * 4       # h / GELU / LN temporaries
        return x_t + w1_t + w2_t + vecs + out_t + acc + casts + temps

    while fp(tm, tk) > budget and tk > 512 and _half_keeps_lane(tk):
        tk //= 2
    while fp(tm, tk) > budget and tm > 256 and _half_keeps_sublane(tm):
        tm //= 2
    while fp(tm, tk) > budget and tk > 128 and _half_keeps_lane(tk):
        tk //= 2
    while fp(tm, tk) > budget and tm > 8 and _half_keeps_sublane(tm):
        tm //= 2
    return tm, tk


def _bert_ffn_impl(hidden_states, w1, b1, w2, b2, ln_gamma, ln_beta, *, tm, tk,
                   compute_dtype, out_dtype, exact_gelu, ln_eps,
                   single_buffer_resident):
    B, S, H = hidden_states.shape
    H1, I = w1.shape
    I2, H2 = w2.shape
    assert H1 == H and I2 == I and H2 == H
    M = B * S

    x2d = hidden_states.reshape(M, H)
    b1r = b1.astype(jnp.float32).reshape(1, I)
    b2r = b2.astype(jnp.float32).reshape(1, H)
    gr = ln_gamma.astype(jnp.float32).reshape(1, H)
    br = ln_beta.astype(jnp.float32).reshape(1, H)

    x_b = x2d.dtype.itemsize
    w_b = w1.dtype.itemsize
    c_b = jnp.dtype(compute_dtype).itemsize
    o_b = jnp.dtype(out_dtype).itemsize

    budget, vmem_limit = _vmem_budget_bytes()
    tm, tk = _select_ffn_tiles(M, H, I, x_b, w_b, c_b, o_b, tm, tk, budget)

    n_i = pl.cdiv(M, tm)
    n_k = pl.cdiv(I, tk)
    nbuf = 1 if single_buffer_resident else None

    kernel = functools.partial(_bert_ffn_kernel, compute_dtype=compute_dtype,
                               exact_gelu=exact_gelu, ln_eps=ln_eps)

    cost = pl.CostEstimate(
        flops=4 * M * H * I,
        transcendentals=M * I,
        bytes_accessed=int(x_b * M * H + 2 * w_b * H * I * n_i
                           + o_b * M * H + 4 * (I + 3 * H)),
    )

    out2d = pl.pallas_call(
        kernel,
        out_shape=jax.ShapeDtypeStruct((M, H), out_dtype),
        grid_spec=pltpu.PrefetchScalarGridSpec(
            num_scalar_prefetch=0,
            grid=(n_i, n_k),
            in_specs=[
                _make_spec((tm, H), lambda i, k: (i, 0), n_buffers=nbuf),  # x (resident)
                pl.BlockSpec((H, tk), lambda i, k: (0, k)),                # W1 chunk
                pl.BlockSpec((1, tk), lambda i, k: (0, k)),                # b1 chunk
                pl.BlockSpec((tk, H), lambda i, k: (k, 0)),                # W2 chunk
                _make_spec((1, H), lambda i, k: (0, 0), n_buffers=nbuf),   # b2
                _make_spec((1, H), lambda i, k: (0, 0), n_buffers=nbuf),   # LN gamma
                _make_spec((1, H), lambda i, k: (0, 0), n_buffers=nbuf),   # LN beta
            ],
            out_specs=pl.BlockSpec((tm, H), lambda i, k: (i, 0)),
            scratch_shapes=[pltpu.VMEM((tm, H), jnp.float32)],
        ),
        compiler_params=pltpu.CompilerParams(
            dimension_semantics=("parallel", "arbitrary"),
            vmem_limit_bytes=int(vmem_limit),
        ),
        cost_estimate=cost,
    )(x2d, w1, b1r, w2, b2r, gr, br)

    return out2d.reshape(B, S, H)


def bert_ffn(hidden_states, w1, b1, w2, b2, ln_gamma, ln_beta, *, tm=1024, tk=1024,
             compute_dtype=jnp.bfloat16, out_dtype=None, exact_gelu=True,
             ln_eps=_LN_EPS, single_buffer_resident=True):
    """Fused BertIntermediate + BertOutput (eval mode). Weights as [H,I] / [I,H]."""
    out_dtype = hidden_states.dtype if out_dtype is None else out_dtype
    try:
        return _bert_ffn_impl(hidden_states, w1, b1, w2, b2, ln_gamma, ln_beta,
                              tm=tm, tk=tk, compute_dtype=compute_dtype,
                              out_dtype=out_dtype, exact_gelu=exact_gelu,
                              ln_eps=ln_eps,
                              single_buffer_resident=single_buffer_resident)
    except Exception:
        if not single_buffer_resident:
            raise
        return _bert_ffn_impl(hidden_states, w1, b1, w2, b2, ln_gamma, ln_beta,
                              tm=tm, tk=tk, compute_dtype=compute_dtype,
                              out_dtype=out_dtype, exact_gelu=exact_gelu,
                              ln_eps=ln_eps, single_buffer_resident=False)


# ---------------------------------------------------------------------------
# References (pure JAX, high precision) and self-test
# ---------------------------------------------------------------------------
def _intermediate_reference(x, w, b):
    y = jnp.einsum("bsh,hi->bsi", x, w, precision=lax.Precision.HIGHEST) + b
    return y * 0.5 * (1.0 + lax.erf(y / math.sqrt(2.0)))


def _ffn_reference(x, w1, b1, w2, b2, gamma, beta, eps=_LN_EPS):
    h = _intermediate_reference(x, w1, b1)
    y = jnp.einsum("bsi,ih->bsh", h, w2, precision=lax.Precision.HIGHEST) + b2 + x
    mu = y.mean(-1, keepdims=True)
    var = ((y - mu) ** 2).mean(-1, keepdims=True)
    return (y - mu) / jnp.sqrt(var + eps) * gamma + beta


if __name__ == "__main__":
    # Small config consistent with the module: batch=2, seq=8, hidden=32, inter=128
    B, S, H, I = 2, 8, 32, 128

    key = jax.random.PRNGKey(0)
    kx, kw1, kb1, kw2, kb2, kg, kb = jax.random.split(key, 7)
    x = jax.random.normal(kx, (B, S, H), dtype=jnp.float32)
    # PyTorch Linear weights are [out, in]; we store the transposes.
    w1 = jax.random.normal(kw1, (H, I), dtype=jnp.float32) * 0.05
    b1 = jax.random.normal(kb1, (I,), dtype=jnp.float32) * 0.05
    w2 = jax.random.normal(kw2, (I, H), dtype=jnp.float32) * 0.05
    b2 = jax.random.normal(kb2, (H,), dtype=jnp.float32) * 0.05
    gamma = 1.0 + 0.1 * jax.random.normal(kg, (H,), dtype=jnp.float32)
    beta = 0.1 * jax.random.normal(kb, (H,), dtype=jnp.float32)

    # ---- BertIntermediate ----
    ref_int = _intermediate_reference(x, w1, b1)
    out_f32 = jax.block_until_ready(
        bert_intermediate(x, w1, b1, compute_dtype=jnp.float32))
    assert out_f32.shape == (B, S, I)
    assert jnp.allclose(out_f32, ref_int, atol=3e-3, rtol=3e-3), \
        "intermediate f32 mismatch vs reference"

    out_bf16 = jax.block_until_ready(bert_intermediate(x, w1, b1))  # bf16 default
    assert jnp.allclose(out_bf16.astype(jnp.float32), ref_int, atol=3e-2, rtol=5e-2), \
        "intermediate bf16 mismatch vs reference"

    # ---- Fused FFN (BertIntermediate + BertOutput) ----
    ref_ffn = _ffn_reference(x, w1, b1, w2, b2, gamma, beta)
    ffn_f32 = jax.block_until_ready(
        bert_ffn(x, w1, b1, w2, b2, gamma, beta, compute_dtype=jnp.float32))
    assert ffn_f32.shape == (B, S, H)
    assert jnp.allclose(ffn_f32, ref_ffn, atol=5e-3, rtol=5e-3), \
        "fused FFN f32 mismatch vs reference"

    ffn_bf16 = jax.block_until_ready(
        bert_ffn(x, w1, b1, w2, b2, gamma, beta))  # bf16 default
    assert jnp.allclose(ffn_bf16.astype(jnp.float32), ref_ffn, atol=5e-2, rtol=5e-2), \
        "fused FFN bf16 mismatch vs reference"

    print("KERNEL_OK")
</pallas_src>

<mosaic_0001>
module attributes {stable_mosaic.version = 11 : i64} {
  func.func @_bert_intermediate_kernel(%arg0: i32, %arg1: i32, %arg2: memref<16x32xf32, #tpu.memory_space<vmem>>, %arg3: memref<32x128xf32, #tpu.memory_space<vmem>>, %arg4: memref<1x128xf32, #tpu.memory_space<vmem>>, %arg5: memref<16x128xf32, #tpu.memory_space<vmem>>) attributes {dimension_semantics = [#tpu.dimension_semantics<parallel>, #tpu.dimension_semantics<arbitrary>], iteration_bounds = array<i64: 1, 1>, scalar_prefetch = 0 : i64, scratch_operands = 0 : i64, tpu.core_type = #tpu.core_type<tc>, window_params = [{transform_indices = @transform_0, window_bounds = array<i64: 16, 32>}, {pipeline_mode = #tpu.pipeline_mode<synchronous>, transform_indices = @transform_1, window_bounds = array<i64: 32, 128>}, {pipeline_mode = #tpu.pipeline_mode<synchronous>, transform_indices = @transform_2, window_bounds = array<i64: 1, 128>}, {transform_indices = @transform_3, window_bounds = array<i64: 16, 128>}]} {
    %c0 = arith.constant 0 : index
    %c0_0 = arith.constant 0 : index
    %0 = vector.load %arg2[%c0, %c0_0] : memref<16x32xf32, #tpu.memory_space<vmem>>, vector<16x32xf32>
    %c0_1 = arith.constant 0 : index
    %c0_2 = arith.constant 0 : index
    %1 = vector.load %arg3[%c0_1, %c0_2] : memref<32x128xf32, #tpu.memory_space<vmem>>, vector<32x128xf32>
    %cst = arith.constant dense<0.000000e+00> : vector<16x128xf32>
    %2 = tpu.matmul %0, %1, %cst {dimension_numbers = #tpu.dot_dimension_numbers<[1], [0], [0], [1], [0, 0, 1, 1], [], []>} : vector<16x32xf32>, vector<32x128xf32>, vector<16x128xf32> -> vector<16x128xf32>
    %c0_3 = arith.constant 0 : index
    %c0_4 = arith.constant 0 : index
    %3 = vector.load %arg4[%c0_3, %c0_4] : memref<1x128xf32, #tpu.memory_space<vmem>>, vector<1x128xf32>
    %4 = vector.broadcast %3 : vector<1x128xf32> to vector<16x128xf32>
    %5 = arith.addf %2, %4 : vector<16x128xf32>
    %cst_5 = arith.constant 0.707106769 : f32
    %6 = vector.broadcast %cst_5 : f32 to vector<16x128xf32>
    %7 = arith.mulf %5, %6 : vector<16x128xf32>
    %8 = math.erf %7 : vector<16x128xf32>
    %cst_6 = arith.constant 5.000000e-01 : f32
    %9 = vector.broadcast %cst_6 : f32 to vector<16x128xf32>
    %10 = arith.mulf %9, %8 : vector<16x128xf32>
    %cst_7 = arith.constant 5.000000e-01 : f32
    %11 = vector.broadcast %cst_7 : f32 to vector<16x128xf32>
    %12 = arith.addf %11, %10 : vector<16x128xf32>
    %13 = arith.mulf %5, %12 : vector<16x128xf32>
    %c0_8 = arith.constant 0 : index
    %c0_9 = arith.constant 0 : index
    %14 = vector.load %arg5[%c0_8, %c0_9] : memref<16x128xf32, #tpu.memory_space<vmem>>, vector<16x128xf32>
    tpu.vector_store %arg5[%c0_8, %c0_9], %13 {strides = array<i32>} : memref<16x128xf32, #tpu.memory_space<vmem>>, vector<16x128xf32>,
    return
  }
  func.func @transform_0(%arg0: i32, %arg1: i32) -> (i32, i32) {
    %c0_i32 = arith.constant 0 : i32
    %c0_i32_0 = arith.constant 0 : i32
    return %arg1, %c0_i32 : i32, i32
  }
  func.func @transform_1(%arg0: i32, %arg1: i32) -> (i32, i32) {
    %c0_i32 = arith.constant 0 : i32
    %c0_i32_0 = arith.constant 0 : i32
    return %c0_i32, %arg0 : i32, i32
  }
  func.func @transform_2(%arg0: i32, %arg1: i32) -> (i32, i32) {
    %c0_i32 = arith.constant 0 : i32
    %c0_i32_0 = arith.constant 0 : i32
    return %c0_i32, %arg0 : i32, i32
  }
  func.func @transform_3(%arg0: i32, %arg1: i32) -> (i32, i32) {
    %c0_i32 = arith.constant 0 : i32
    return %arg1, %arg0 : i32, i32
  }
}

module attributes {stable_mosaic.version = 11 : i64} {
  func.func @_bert_intermediate_kernel(%arg0: i32, %arg1: i32, %arg2: memref<16x32xf32, #tpu.memory_space<vmem>>, %arg3: memref<32x128xf32, #tpu.memory_space<vmem>>, %arg4: memref<1x128xf32, #tpu.memory_space<vmem>>, %arg5: memref<16x128xf32, #tpu.memory_space<vmem>>) attributes {dimension_semantics = [#tpu.dimension_semantics<parallel>, #tpu.dimension_semantics<arbitrary>], iteration_bounds = array<i64: 1, 1>, scalar_prefetch = 0 : i64, scratch_operands = 0 : i64, tpu.core_type = #tpu.core_type<tc>, window_params = [{transform_indices = @transform_0, window_bounds = array<i64: 16, 32>}, {transform_indices = @transform_1, window_bounds = array<i64: 32, 128>}, {transform_indices = @transform_2, window_bounds = array<i64: 1, 128>}, {transform_indices = @transform_3, window_bounds = array<i64: 16, 128>}]} {
    %c0 = arith.constant 0 : index
    %c0_0 = arith.constant 0 : index
    %0 = vector.load %arg2[%c0, %c0_0] : memref<16x32xf32, #tpu.memory_space<vmem>>, vector<16x32xf32>
    %c0_1 = arith.constant 0 : index
    %c0_2 = arith.constant 0 : index
    %1 = vector.load %arg3[%c0_1, %c0_2] : memref<32x128xf32, #tpu.memory_space<vmem>>, vector<32x128xf32>
    %cst = arith.constant dense<0.000000e+00> : vector<16x128xf32>
    %2 = tpu.matmul %0, %1, %cst {dimension_numbers = #tpu.dot_dimension_numbers<[1], [0], [0], [1], [0, 0, 1, 1], [], []>} : vector<16x32xf32>, vector<32x128xf32>, vector<16x128xf32> -> vector<16x128xf32>
    %c0_3 = arith.constant 0 : index
    %c0_4 = arith.constant 0 : index
    %3 = vector.load %arg4[%c0_3, %c0_4] : memref<1x128xf32, #tpu.memory_space<vmem>>, vector<1x128xf32>
    %4 = vector.broadcast %3 : vector<1x128xf32> to vector<16x128xf32>
    %5 = arith.addf %2, %4 : vector<16x128xf32>
    %cst_5 = arith.constant 0.707106769 : f32
    %6 = vector.broadcast %cst_5 : f32 to vector<16x128xf32>
    %7 = arith.mulf %5, %6 : vector<16x128xf32>
    %8 = math.erf %7 : vector<16x128xf32>
    %cst_6 = arith.constant 5.000000e-01 : f32
    %9 = vector.broadcast %cst_6 : f32 to vector<16x128xf32>
    %10 = arith.mulf %9, %8 : vector<16x128xf32>
    %cst_7 = arith.constant 5.000000e-01 : f32
    %11 = vector.broadcast %cst_7 : f32 to vector<16x128xf32>
    %12 = arith.addf %11, %10 : vector<16x128xf32>
    %13 = arith.mulf %5, %12 : vector<16x128xf32>
    %c0_8 = arith.constant 0 : index
    %c0_9 = arith.constant 0 : index
    %14 = vector.load %arg5[%c0_8, %c0_9] : memref<16x128xf32, #tpu.memory_space<vmem>>, vector<16x128xf32>
    tpu.vector_store %arg5[%c0_8, %c0_9], %13 {strides = array<i32>} : memref<16x128xf32, #tpu.memory_space<vmem>>, vector<16x128xf32>,
    return
  }
  func.func @transform_0(%arg0: i32, %arg1: i32) -> (i32, i32) {
    %c0_i32 = arith.constant 0 : i32
    %c0_i32_0 = arith.constant 0 : i32
    return %arg1, %c0_i32 : i32, i32
  }
  func.func @transform_1(%arg0: i32, %arg1: i32) -> (i32, i32) {
    %c0_i32 = arith.constant 0 : i32
    %c0_i32_0 = arith.constant 0 : i32
    return %c0_i32, %arg0 : i32, i32
  }
  func.func @transform_2(%arg0: i32, %arg1: i32) -> (i32, i32) {
    %c0_i32 = arith.constant 0 : i32
    %c0_i32_0 = arith.constant 0 : i32
    return %c0_i32, %arg0 : i32, i32
  }
  func.func @transform_3(%arg0: i32, %arg1: i32) -> (i32, i32) {
    %c0_i32 = arith.constant 0 : i32
    return %arg1, %arg0 : i32, i32
  }
}

</mosaic_0001>

<bundles_post_ra>
// kernel: tpu_custom_call.1
= control target key start
LH: loop header
LB: loop body
LE: loop exit
PB: predicated region body
PF: predicated region fallthrough
CT: control target
= control target key end

     0   :  { %8 = vsyncpa [#allocation3], 0  ;;  %s350_s0 = inlined_call_operand.hbm [shape: f32[16,32], index: 0, kind: input, shape index: {}]   ;;  %s351_s1 = inlined_call_operand.hbm [shape: f32[32,128], index: 1, kind: input, shape index: {}]   ;;  %s352_s2 = inlined_call_operand.vmem [shape: f32[1,128], index: 2, kind: input, shape index: {}]   ;;  %s353_s3 = inlined_call_operand.hbm [shape: f32[16,128], index: 3, kind: output, shape index: {}]  }
   0x1   :  { %9 = vsyncpa [#allocation6], 0 }
   0x2   :  { %10 = vsyncpa [#allocation4], 0  ;;  %s277_s12 = smov [#allocation2]   ;;  %s205_s16 = scalar_lea.hbm %s350_s0, 256 }
   0x3   :  { %s16_s13 = sshll.u32 %s277_s12, 4  ;;  %p206_p0 = scmp.ne.s32.totalorder %s350_s0, %s205_s16  ;;  %s17_s13 = int_to_ptr.vmem [resolvable:$true] %s16_s13 }
   0x4   :  { %p209_p1 = scmp.lt.u32.totalorder %s205_s16, %s350_s0 }
   0x6   :  { %p211_p2 = pnand %p209_p1, %p206_p0 }
   0x8   :  { %214 = shalt.err (!%p211_p2)
}
   0x9   :  { %s215_s21 = scalar_lea.vmem %s17_s13, 256  ;;  %p220_p4 = scmp.lt.s32.totalorder %s17_s13, %s17_s13 }
   0xa   :  { %p216_p3 = scmp.ne.s32.totalorder %s17_s13, %s215_s21  ;;  %p221_p5 = scmp.lt.s32.totalorder %s215_s21, %s215_s21 }
   0xc   :  { %p222_p6 = por %p221_p5, %p220_p4 }
   0xe   :  { %p223_p7 = pnand %p222_p6, %p216_p3 }
  0x10   :  { %226 = shalt.err (!%p223_p7)
}
  0x11   :  { %s278_s22 = smov 128   ;;  %s279_s23 = smov 8  }
  0x12   :  { %22 = dma.hbm_to_vmem [thread:$0]  %s350_s0, 256, %s17_s13, [#allocation3], %s278_s22, %s278_s22, %s279_s23  }
  0x13   :  { %s280_s26 = smov [#allocation5]   ;;  %s227_s30 = scalar_lea.hbm %s351_s1, 512 }
  0x14   :  { %s28_s27 = sshll.u32 %s280_s26, 4  ;;  %p228_p8 = scmp.ne.s32.totalorder %s351_s1, %s227_s30  ;;  %s29_s27 = int_to_ptr.vmem [resolvable:$true] %s28_s27 }
  0x15   :  { %p231_p9 = scmp.lt.u32.totalorder %s227_s30, %s351_s1 }
  0x17   :  { %p233_p10 = pnand %p231_p9, %p228_p8 }
  0x19   :  { %236 = shalt.err (!%p233_p10)
}
  0x1a   :  { %s237_s8 = scalar_lea.vmem %s29_s27, 512  ;;  %p242_p12 = scmp.lt.s32.totalorder %s29_s27, %s29_s27 }
  0x1b   :  { %p238_p11 = scmp.ne.s32.totalorder %s29_s27, %s237_s8  ;;  %p243_p13 = scmp.lt.s32.totalorder %s237_s8, %s237_s8 }
  0x1d   :  { %p244_p0 = por %p243_p13, %p242_p12 }
  0x1f   :  { %p245_p1 = pnand %p244_p0, %p238_p11 }
  0x21   :  { %248 = shalt.err (!%p245_p1)
}
  0x22   :  { %34 = dma.hbm_to_vmem [thread:$0]  %s351_s1, 512, %s29_s27, [#allocation6], %s278_s22, %s278_s22, %s279_s23  }
  0x23   :  { %271 = dma.done.wait [#allocation3], 256  }
  0x24   :  { %272 = vsyncadd [#allocation3], 4294967040 }
  0x25   :  { %273 = dma.done.wait [#allocation6], 512  }
  0x26   :  { %274 = vsyncadd [#allocation6], 4294966784  ;;  %vm56_vm0 = vcmask 261120   ;;  %v45_v0 = vld [vmem:[#allocation5] sm:$0xff]  ;;  %v46_v1 = vld [vmem:[#allocation5 + $0x8] sm:$0xff]  ;;  %s281_s11 = smov [#allocation7]  }
  0x27   :  { %v47_v2 = vld [vmem:[#allocation5 + $0x10] sm:$0xff]  ;;  %v188_v3 = vpack.c.bf16 %v46_v1, %v45_v0  ;;  %v48_v4 = vld [vmem:[#allocation5 + $0x18] sm:$0xff]  ;;  %s155_s12 = sshll.u32 %s281_s11, 4  ;;  %s156_s12 = int_to_ptr.vmem [resolvable:$true] %s155_s12 }
  0x28   :  { %v43_v5 = vld [vmem:[#allocation2] sm:$0xff]  ;;  %v192_v6 = vpack.c.bf16 %v48_v4, %v47_v2  ;;  %v44_v7 = vld [vmem:[#allocation2 + $0x8] sm:$0xff]  ;;  %p254_p3 = scmp.lt.s32.totalorder %s156_s12, %s156_s12 }
  0x29   :  { %185 = vmatprep.mubr.msk.f32.mxu0 %vm56_vm0, %v43_v5  ;;  %189 = vmatprep.subr.bf16.mxu0 %v188_v3  ;;  %v168_v8 = vld [vmem:[%s352_s2] ss:$0 sm:$0xff]  ;;  %s249_s2 = scalar_lea.vmem %s156_s12, 256 }
  0x2a   :  { %191 = vmatpush3.bf16.msra.mxu0 %v188_v3  ;;  %p250_p2 = scmp.ne.s32.totalorder %s156_s12, %s249_s2  ;;  %p255_p4 = scmp.lt.s32.totalorder %s249_s2, %s249_s2 }
  0x2b   :  { %193 = vmatprep.subr.bf16.mxu0 %v192_v6 }
  0x2c   :  { %p256_p5 = por %p255_p4, %p254_p3 }
  0x2e   :  { %195 = vmatpush3.bf16.msra.mxu0 %v192_v6  ;;  %p257_p6 = pnand %p256_p5, %p250_p2 }
  0x31   :  { %186 = vmatmul.mubr.msk.f32.vlgmr.msra.gmra.mrb[0].mxu0 %vm56_vm0, %v44_v7 }
 0x104   :  { %v187_v9 = vpop.f32.mrb[0].mxu0 }
 0x105   :  { %v135_v10 = vadd.f32 %v187_v9, %v168_v8  ;;  %v129_v11 = vpop.f32.mrb[1].mxu0 }
 0x106   :  { %v130_v12 = vadd.f32 %v168_v8, %v129_v11 }
 0x107   :  { %v139_v13 = vmul.f32 0.70710677, %v135_v10 }
 0x108   :  { %v138_v14 = vmul.f32 0.70710677, %v130_v12 }
 0x109   :  { %201 = verf.f32 %v139_v13 }
 0x10a   :  { %203 = verf.f32 %v138_v14 }
 0x113   :  { %v202_v15 = vpop.eup %201 }
 0x114   :  { %v204_v16 = vpop.eup %203  ;;  %v143_v17 = vmul.f32 0.5, %v202_v15 }
 0x115   :  { %v142_v18 = vmul.f32 0.5, %v204_v16 }
 0x116   :  { %v145_v19 = vadd.f32 0.5, %v143_v17 }
 0x117   :  { %v144_v20 = vadd.f32 0.5, %v142_v18 }
 0x118   :  { %v147_v21 = vmul.f32 %v145_v19, %v135_v10 }
 0x119   :  { %v146_v22 = vmul.f32 %v144_v20, %v130_v12 }
 0x11a   :  { %149 = vst [vmem:[#allocation7 + $0x8] sm:$0xff] %v147_v21 }
 0x11b   :  { %148 = vst [vmem:[#allocation7] sm:$0xff] %v146_v22 }
 0x11c   :  { %260 = shalt.err (!%p257_p6)
}
 0x11d   :  { %s261_s15 = scalar_lea.hbm %s353_s3, 256 }
 0x11e   :  { %p262_p7 = scmp.ne.s32.totalorder %s353_s3, %s261_s15  ;;  %p265_p8 = scmp.lt.u32.totalorder %s261_s15, %s353_s3 }
 0x120   :  { %p267_p9 = pnand %p265_p8, %p262_p7 }
 0x122   :  { %270 = shalt.err (!%p267_p9)
}
 0x123   :  { %161 = dma.vmem_to_hbm [thread:$0]  %s156_s12, 256, %s353_s3, [#allocation4], %s278_s22, %s278_s22, %s279_s23  }
 0x124   :  { %275 = dma.done.wait [#allocation4], 256  }
 0x125   :  { %276 = vsyncadd [#allocation4], 4294967040 }
 0x126   :  { %165 = vsyncpa [#allocation3], 1 }
 0x127   :  { %166 = vsyncpa [#allocation6], 1 }
 0x128   :  { %167 = vsyncpa [#allocation4], 1 }

// kernel: tpu_custom_call.1
= control target key start
LH: loop header
LB: loop body
LE: loop exit
PB: predicated region body
PF: predicated region fallthrough
CT: control target
= control target key end

     0   :  { %8 = vsyncpa [#allocation3], 0  ;;  %s350_s0 = inlined_call_operand.hbm [shape: f32[16,32], index: 0, kind: input, shape index: {}]   ;;  %s351_s1 = inlined_call_operand.hbm [shape: f32[32,128], index: 1, kind: input, shape index: {}]   ;;  %s352_s2 = inlined_call_operand.vmem [shape: f32[1,128], index: 2, kind: input, shape index: {}]   ;;  %s353_s3 = inlined_call_operand.hbm [shape: f32[16,128], index: 3, kind: output, shape index: {}]  }
   0x1   :  { %9 = vsyncpa [#allocation6], 0 }
   0x2   :  { %10 = vsyncpa [#allocation4], 0  ;;  %s277_s12 = smov [#allocation2]   ;;  %s205_s16 = scalar_lea.hbm %s350_s0, 256 }
   0x3   :  { %s16_s13 = sshll.u32 %s277_s12, 4  ;;  %p206_p0 = scmp.ne.s32.totalorder %s350_s0, %s205_s16  ;;  %s17_s13 = int_to_ptr.vmem [resolvable:$true] %s16_s13 }
   0x4   :  { %p209_p1 = scmp.lt.u32.totalorder %s205_s16, %s350_s0 }
   0x6   :  { %p211_p2 = pnand %p209_p1, %p206_p0 }
   0x8   :  { %214 = shalt.err (!%p211_p2)
}
   0x9   :  { %s215_s21 = scalar_lea.vmem %s17_s13, 256  ;;  %p220_p4 = scmp.lt.s32.totalorder %s17_s13, %s17_s13 }
   0xa   :  { %p216_p3 = scmp.ne.s32.totalorder %s17_s13, %s215_s21  ;;  %p221_p5 = scmp.lt.s32.totalorder %s215_s21, %s215_s21 }
   0xc   :  { %p222_p6 = por %p221_p5, %p220_p4 }
   0xe   :  { %p223_p7 = pnand %p222_p6, %p216_p3 }
  0x10   :  { %226 = shalt.err (!%p223_p7)
}
  0x11   :  { %s278_s22 = smov 128   ;;  %s279_s23 = smov 8  }
  0x12   :  { %22 = dma.hbm_to_vmem [thread:$0]  %s350_s0, 256, %s17_s13, [#allocation3], %s278_s22, %s278_s22, %s279_s23  }
  0x13   :  { %s280_s26 = smov [#allocation5]   ;;  %s227_s30 = scalar_lea.hbm %s351_s1, 512 }
  0x14   :  { %s28_s27 = sshll.u32 %s280_s26, 4  ;;  %p228_p8 = scmp.ne.s32.totalorder %s351_s1, %s227_s30  ;;  %s29_s27 = int_to_ptr.vmem [resolvable:$true] %s28_s27 }
  0x15   :  { %p231_p9 = scmp.lt.u32.totalorder %s227_s30, %s351_s1 }
  0x17   :  { %p233_p10 = pnand %p231_p9, %p228_p8 }
  0x19   :  { %236 = shalt.err (!%p233_p10)
}
  0x1a   :  { %s237_s8 = scalar_lea.vmem %s29_s27, 512  ;;  %p242_p12 = scmp.lt.s32.totalorder %s29_s27, %s29_s27 }
  0x1b   :  { %p238_p11 = scmp.ne.s32.totalorder %s29_s27, %s237_s8  ;;  %p243_p13 = scmp.lt.s32.totalorder %s237_s8, %s237_s8 }
  0x1d   :  { %p244_p0 = por %p243_p13, %p242_p12 }
  0x1f   :  { %p245_p1 = pnand %p244_p0, %p238_p11 }
  0x21   :  { %248 = shalt.err (!%p245_p1)
}
  0x22   :  { %34 = dma.hbm_to_vmem [thread:$0]  %s351_s1, 512, %s29_s27, [#allocation6], %s278_s22, %s278_s22, %s279_s23  }
  0x23   :  { %271 = dma.done.wait [#allocation3], 256  }
  0x24   :  { %272 = vsyncadd [#allocation3], 4294967040 }
  0x25   :  { %273 = dma.done.wait [#allocation6], 512  }
  0x26   :  { %274 = vsyncadd [#allocation6], 4294966784  ;;  %vm56_vm0 = vcmask 261120   ;;  %v45_v0 = vld [vmem:[#allocation5] sm:$0xff]  ;;  %v46_v1 = vld [vmem:[#allocation5 + $0x8] sm:$0xff]  ;;  %s281_s11 = smov [#allocation7]  }
  0x27   :  { %v47_v2 = vld [vmem:[#allocation5 + $0x10] sm:$0xff]  ;;  %v188_v3 = vpack.c.bf16 %v46_v1, %v45_v0  ;;  %v48_v4 = vld [vmem:[#allocation5 + $0x18] sm:$0xff]  ;;  %s155_s12 = sshll.u32 %s281_s11, 4  ;;  %s156_s12 = int_to_ptr.vmem [resolvable:$true] %s155_s12 }
  0x28   :  { %v43_v5 = vld [vmem:[#allocation2] sm:$0xff]  ;;  %v192_v6 = vpack.c.bf16 %v48_v4, %v47_v2  ;;  %v44_v7 = vld [vmem:[#allocation2 + $0x8] sm:$0xff]  ;;  %p254_p3 = scmp.lt.s32.totalorder %s156_s12, %s156_s12 }
  0x29   :  { %185 = vmatprep.mubr.msk.f32.mxu0 %vm56_vm0, %v43_v5  ;;  %189 = vmatprep.subr.bf16.mxu0 %v188_v3  ;;  %v168_v8 = vld [vmem:[%s352_s2] ss:$0 sm:$0xff]  ;;  %s249_s2 = scalar_lea.vmem %s156_s12, 256 }
  0x2a   :  { %191 = vmatpush3.bf16.msra.mxu0 %v188_v3  ;;  %p250_p2 = scmp.ne.s32.totalorder %s156_s12, %s249_s2  ;;  %p255_p4 = scmp.lt.s32.totalorder %s249_s2, %s249_s2 }
  0x2b   :  { %193 = vmatprep.subr.bf16.mxu0 %v192_v6 }
  0x2c   :  { %p256_p5 = por %p255_p4, %p254_p3 }
  0x2e   :  { %195 = vmatpush3.bf16.msra.mxu0 %v192_v6  ;;  %p257_p6 = pnand %p256_p5, %p250_p2 }
  0x31   :  { %186 = vmatmul.mubr.msk.f32.vlgmr.msra.gmra.mrb[0].mxu0 %vm56_vm0, %v44_v7 }
 0x104   :  { %v187_v9 = vpop.f32.mrb[0].mxu0 }
 0x105   :  { %v135_v10 = vadd.f32 %v187_v9, %v168_v8  ;;  %v129_v11 = vpop.f32.mrb[1].mxu0 }
 0x106   :  { %v130_v12 = vadd.f32 %v168_v8, %v129_v11 }
 0x107   :  { %v139_v13 = vmul.f32 0.70710677, %v135_v10 }
 0x108   :  { %v138_v14 = vmul.f32 0.70710677, %v130_v12 }
 0x109   :  { %201 = verf.f32 %v139_v13 }
 0x10a   :  { %203 = verf.f32 %v138_v14 }
 0x113   :  { %v202_v15 = vpop.eup %201 }
 0x114   :  { %v204_v16 = vpop.eup %203  ;;  %v143_v17 = vmul.f32 0.5, %v202_v15 }
 0x115   :  { %v142_v18 = vmul.f32 0.5, %v204_v16 }
 0x116   :  { %v145_v19 = vadd.f32 0.5, %v143_v17 }
 0x117   :  { %v144_v20 = vadd.f32 0.5, %v142_v18 }
 0x118   :  { %v147_v21 = vmul.f32 %v145_v19, %v135_v10 }
 0x119   :  { %v146_v22 = vmul.f32 %v144_v20, %v130_v12 }
 0x11a   :  { %149 = vst [vmem:[#allocation7 + $0x8] sm:$0xff] %v147_v21 }
 0x11b   :  { %148 = vst [vmem:[#allocation7] sm:$0xff] %v146_v22 }
 0x11c   :  { %260 = shalt.err (!%p257_p6)
}
 0x11d   :  { %s261_s15 = scalar_lea.hbm %s353_s3, 256 }
 0x11e   :  { %p262_p7 = scmp.ne.s32.totalorder %s353_s3, %s261_s15  ;;  %p265_p8 = scmp.lt.u32.totalorder %s261_s15, %s353_s3 }
 0x120   :  { %p267_p9 = pnand %p265_p8, %p262_p7 }
 0x122   :  { %270 = shalt.err (!%p267_p9)
}
 0x123   :  { %161 = dma.vmem_to_hbm [thread:$0]  %s156_s12, 256, %s353_s3, [#allocation4], %s278_s22, %s278_s22, %s279_s23  }
 0x124   :  { %275 = dma.done.wait [#allocation4], 256  }
 0x125   :  { %276 = vsyncadd [#allocation4], 4294967040 }
 0x126   :  { %165 = vsyncpa [#allocation3], 1 }
 0x127   :  { %166 = vsyncpa [#allocation6], 1 }
 0x128   :  { %167 = vsyncpa [#allocation4], 1 }

</bundles_post_ra>
